<compile_context>
chip_gen: v7x
topology: tpu7x:2x2x1
jax: 0.10.0
libtpu: 0.0.40
codegen_flags: <defaults>
</compile_context>

<pallas_src>
import functools

import numpy as np
import jax
import jax.numpy as jnp
from jax import lax
from jax.experimental import pallas as pl
from jax.experimental.pallas import tpu as pltpu  # noqa: F401  (TPU backend)

IN_F = 6
OUT_F = 3
HID = 64
LANES = 128                      # lane-dense working width
MIN_FACTOR = 0.1
MIN_NODES = int(round(MIN_FACTOR * HID))  # 6
EPS = 1e-5
DEFAULT_FACTORS = [(0.25, 0.25), (0.5, 0.5), (0.75, 0.75), (1.0, 1.0)]
NUM_VEC_ROWS = 10                # b0,g0,be0,b1,g1,be1,b2,g2,be2,b3


def _slab_layout(lb):
    """Row offsets of each block inside the packed (rows, 128) parameter slab."""
    off, r = {}, 0
    off["w1"] = r;   r += LANES      # (128,128): W1^T zero-padded
    off["w2"] = r;   r += LANES      # (128,128): W2^T zero-padded
    off["w3"] = r;   r += LANES      # (128,128): W3^T zero-padded (lane-dense out)
    off["mask"] = r; r += lb         # (LB,128): 1.0 on active lanes (batch-major)
    off["invn"] = r; r += lb         # (LB,128): 1/n replicated across lanes
    off["w0"] = r;   r += IN_F       # (6,128):  W0^T zero-padded
    off["vec"] = r;  r += NUM_VEC_ROWS
    off["rows"] = r
    return off


def pack_params(params, lods, batch):
    """Build the single packed parameter slab ONCE at init time (host-side)."""
    num_lods = len(lods)
    n_active = [int(l) + MIN_NODES for l in lods]
    lb = num_lods * batch
    off = _slab_layout(lb)
    slab = np.zeros((off["rows"], LANES), np.float32)

    slab[off["w0"]:off["w0"] + IN_F, :HID] = np.asarray(params["w0t"])
    slab[off["w1"]:off["w1"] + HID, :HID] = np.asarray(params["w1t"])
    slab[off["w2"]:off["w2"] + HID, :HID] = np.asarray(params["w2t"])
    slab[off["w3"]:off["w3"] + HID, :OUT_F] = np.asarray(params["w3t"])

    v = off["vec"]
    slab[v + 0, :HID] = np.asarray(params["b0"])[0]
    slab[v + 1, :HID] = np.asarray(params["g0"])[0]
    slab[v + 2, :HID] = np.asarray(params["be0"])[0]
    slab[v + 3, :HID] = np.asarray(params["b1"])[0]
    slab[v + 4, :HID] = np.asarray(params["g1"])[0]
    slab[v + 5, :HID] = np.asarray(params["be1"])[0]
    slab[v + 6, :HID] = np.asarray(params["b2"])[0]
    slab[v + 7, :HID] = np.asarray(params["be2"])[0] * 0.0 + np.asarray(params["g2"])[0]
    slab[v + 8, :HID] = np.asarray(params["be2"])[0]
    slab[v + 9, :OUT_F] = np.asarray(params["b3"])[0]

    # Per-row (batch-major: row = b*num_lods + l) active-lane mask and 1/n.
    for r in range(lb):
        n = n_active[r % num_lods]
        slab[off["mask"] + r, :n] = 1.0
        slab[off["invn"] + r, :] = 1.0 / n
    return jnp.asarray(slab)


def _make_kernel(lb):
    """Single-step kernel; lb and all slab offsets are trace-time constants."""
    off = _slab_layout(lb)
    W0, W1, W2, W3 = off["w0"], off["w1"], off["w2"], off["w3"]
    M0, I0, V0 = off["mask"], off["invn"], off["vec"]

    def kernel(x_ref, p_ref, out_ref):
        maskf = p_ref[M0:M0 + lb, :]     # (LB,128) 1.0 on lanes < n(row), else 0
        invn = p_ref[I0:I0 + lb, :]      # (LB,128) 1/n(row) on every lane

        def ln_relu(h_lin, g, be):
            # Width-n LayerNorm emulated at 128 lanes via the active-lane mask.
            h = h_lin * maskf
            mean = jnp.sum(h, axis=1, keepdims=True) * invn      # (LB,128)
            c = h - mean
            d = c * maskf                                        # zero inactive lanes
            var = jnp.sum(d * d, axis=1, keepdims=True) * invn   # (LB,128)
            hn = d * lax.rsqrt(var + EPS)                        # inactive lanes stay 0
            return jnp.maximum(g * hn + be * maskf, 0.0)

        x = x_ref[...]                                           # (LB, IN_F)
        h = jnp.dot(x, p_ref[W0:W0 + IN_F, :],
                    preferred_element_type=jnp.float32) + p_ref[V0 + 0:V0 + 1, :]
        h = ln_relu(h, p_ref[V0 + 1:V0 + 2, :], p_ref[V0 + 2:V0 + 3, :])
        h = jnp.dot(h, p_ref[W1:W1 + LANES, :],
                    preferred_element_type=jnp.float32) + p_ref[V0 + 3:V0 + 4, :]
        h = ln_relu(h, p_ref[V0 + 4:V0 + 5, :], p_ref[V0 + 5:V0 + 6, :])
        h = jnp.dot(h, p_ref[W2:W2 + LANES, :],
                    preferred_element_type=jnp.float32) + p_ref[V0 + 6:V0 + 7, :]
        h = ln_relu(h, p_ref[V0 + 7:V0 + 8, :], p_ref[V0 + 8:V0 + 9, :])
        out = (jnp.dot(h, p_ref[W3:W3 + LANES, :],
                       preferred_element_type=jnp.float32)
               + p_ref[V0 + 9:V0 + 10, :])                       # lane-dense b3 row
        out_ref[...] = out                                       # one full (LB,128) store

    return kernel


def slimnet_pallas(x, slab, num_lods):
    batch = x.shape[0]
    lb = batch * num_lods
    # Batch-major stacking: row = b*num_lods + l  ->  epilogue is a pure reshape.
    xs = jnp.repeat(x, num_lods, axis=0)                         # (LB, IN_F)
    out = pl.pallas_call(
        _make_kernel(lb),
        out_shape=jax.ShapeDtypeStruct((lb, LANES), jnp.float32),
        # No grid / BlockSpecs: default whole-array VMEM blocks; 2 input DMAs
        # (x, packed param slab) + 1 lane-dense output DMA.
    )(xs, slab)
    return out[:, :OUT_F].reshape(batch, num_lods, OUT_F)


def slimnet_reference(x, params, lods):
    """Pure-JAX reference mirroring the PyTorch forward exactly (f32)."""
    outs = []
    for lod in lods:
        n = int(lod) + MIN_NODES
        w0 = params["w0t"].T   # (HID, IN_F)
        w1 = params["w1t"].T
        w2 = params["w2t"].T
        w3 = params["w3t"].T   # (OUT_F, HID)

        def ln(h, g, b, width):
            mean = h.mean(axis=1, keepdims=True)
            var = ((h - mean) ** 2).mean(axis=1, keepdims=True)
            hn = (h - mean) / jnp.sqrt(var + EPS)
            return g[:width][None] * hn + b[:width][None]

        h = x @ w0[:n, :].T + params["b0"][0, :n]
        h = jax.nn.relu(ln(h, params["g0"][0], params["be0"][0], n))
        h = h @ w1[:n, :n].T + params["b1"][0, :n]
        h = jax.nn.relu(ln(h, params["g1"][0], params["be1"][0], n))
        h = h @ w2[:n, :n].T + params["b2"][0, :n]
        h = jax.nn.relu(ln(h, params["g2"][0], params["be2"][0], n))
        out = h @ w3[:, :n].T + params["b3"][0]
        outs.append(out)
    return jnp.stack(outs, axis=1)


def init_params(key):
    ks = jax.random.split(key, 8)
    scale = 0.3
    return {
        "w0t": scale * jax.random.normal(ks[0], (IN_F, HID), jnp.float32),
        "b0":  scale * jax.random.normal(ks[1], (1, HID), jnp.float32),
        "g0":  jnp.ones((1, HID), jnp.float32),
        "be0": jnp.zeros((1, HID), jnp.float32),
        "w1t": scale * jax.random.normal(ks[2], (HID, HID), jnp.float32),
        "b1":  scale * jax.random.normal(ks[3], (1, HID), jnp.float32),
        "g1":  jnp.ones((1, HID), jnp.float32),
        "be1": jnp.zeros((1, HID), jnp.float32),
        "w2t": scale * jax.random.normal(ks[4], (HID, HID), jnp.float32),
        "b2":  scale * jax.random.normal(ks[5], (1, HID), jnp.float32),
        "g2":  jnp.ones((1, HID), jnp.float32),
        "be2": jnp.zeros((1, HID), jnp.float32),
        "w3t": scale * jax.random.normal(ks[6], (HID, OUT_F), jnp.float32),
        "b3":  scale * jax.random.normal(ks[7], (1, OUT_F), jnp.float32),
    }


if __name__ == "__main__":
    key = jax.random.PRNGKey(0)
    k_x, k_p = jax.random.split(key)

    B = 8
    x = jax.random.normal(k_x, (B, IN_F), jnp.float32)
    params = init_params(k_p)

    # Default lods from the module: round(f * hidden) - min_nodes -> [10, 26, 42, 58]
    lods = tuple(int(np.round(f[0] * HID - MIN_NODES)) for f in DEFAULT_FACTORS)

    # Pack all parameters + masks into ONE slab, once, outside the jitted call.
    slab = pack_params(params, lods, B)

    fwd = jax.jit(functools.partial(slimnet_pallas, num_lods=len(lods)))
    out = jax.block_until_ready(fwd(x, slab))

    ref = slimnet_reference(x, params, lods)
    assert out.shape == (B, len(lods), OUT_F), out.shape
    np.testing.assert_allclose(np.asarray(out), np.asarray(ref), rtol=1e-3, atol=1e-3)

    print("KERNEL_OK")
</pallas_src>

<mosaic_0001>
module attributes {stable_mosaic.version = 11 : i64} {
  func.func @kernel(%arg0: memref<32x6xf32, #tpu.memory_space<vmem>>, %arg1: memref<464x128xf32, #tpu.memory_space<vmem>>, %arg2: memref<32x128xf32, #tpu.memory_space<vmem>>) attributes {dimension_semantics = [], scalar_prefetch = 0 : i64, scratch_operands = 0 : i64, tpu.core_type = #tpu.core_type<tc>} {
    %c384 = arith.constant 384 : index
    %c0 = arith.constant 0 : index
    %0 = vector.load %arg1[%c384, %c0] : memref<464x128xf32, #tpu.memory_space<vmem>>, vector<32x128xf32>
    %c416 = arith.constant 416 : index
    %c0_0 = arith.constant 0 : index
    %1 = vector.load %arg1[%c416, %c0_0] : memref<464x128xf32, #tpu.memory_space<vmem>>, vector<32x128xf32>
    %c0_1 = arith.constant 0 : index
    %c0_2 = arith.constant 0 : index
    %2 = vector.load %arg0[%c0_1, %c0_2] : memref<32x6xf32, #tpu.memory_space<vmem>>, vector<32x6xf32>
    %c448 = arith.constant 448 : index
    %c0_3 = arith.constant 0 : index
    %3 = vector.load %arg1[%c448, %c0_3] : memref<464x128xf32, #tpu.memory_space<vmem>>, vector<6x128xf32>
    %cst = arith.constant dense<0.000000e+00> : vector<32x128xf32>
    %4 = tpu.matmul %2, %3, %cst {dimension_numbers = #tpu.dot_dimension_numbers<[1], [0], [0], [1], [0, 0, 1, 1], [], []>} : vector<32x6xf32>, vector<6x128xf32>, vector<32x128xf32> -> vector<32x128xf32>
    %c454 = arith.constant 454 : index
    %c0_4 = arith.constant 0 : index
    %5 = vector.load %arg1[%c454, %c0_4] : memref<464x128xf32, #tpu.memory_space<vmem>>, vector<1x128xf32>
    %6 = vector.broadcast %5 : vector<1x128xf32> to vector<32x128xf32>
    %7 = arith.addf %4, %6 : vector<32x128xf32>
    %c455 = arith.constant 455 : index
    %c0_5 = arith.constant 0 : index
    %8 = vector.load %arg1[%c455, %c0_5] : memref<464x128xf32, #tpu.memory_space<vmem>>, vector<1x128xf32>
    %c456 = arith.constant 456 : index
    %c0_6 = arith.constant 0 : index
    %9 = vector.load %arg1[%c456, %c0_6] : memref<464x128xf32, #tpu.memory_space<vmem>>, vector<1x128xf32>
    %10 = arith.mulf %7, %0 : vector<32x128xf32>
    %cst_7 = arith.constant dense<0.000000e+00> : vector<32xf32>
    %11 = vector.multi_reduction <add>, %10, %cst_7 [1] : vector<32x128xf32> to vector<32xf32>
    %12 = vector.shape_cast %11 : vector<32xf32> to vector<32x1xf32>
    %13 = vector.broadcast %12 : vector<32x1xf32> to vector<32x128xf32>
    %14 = arith.mulf %13, %1 : vector<32x128xf32>
    %15 = arith.subf %10, %14 : vector<32x128xf32>
    %16 = arith.mulf %15, %0 : vector<32x128xf32>
    %17 = arith.mulf %16, %16 : vector<32x128xf32>
    %cst_8 = arith.constant dense<0.000000e+00> : vector<32xf32>
    %18 = vector.multi_reduction <add>, %17, %cst_8 [1] : vector<32x128xf32> to vector<32xf32>
    %19 = vector.shape_cast %18 : vector<32xf32> to vector<32x1xf32>
    %20 = vector.broadcast %19 : vector<32x1xf32> to vector<32x128xf32>
    %21 = arith.mulf %20, %1 : vector<32x128xf32>
    %cst_9 = arith.constant 9.99999974E-6 : f32
    %22 = vector.broadcast %cst_9 : f32 to vector<32x128xf32>
    %23 = arith.addf %21, %22 : vector<32x128xf32>
    %24 = math.rsqrt %23 : vector<32x128xf32>
    %25 = arith.mulf %16, %24 : vector<32x128xf32>
    %26 = vector.broadcast %8 : vector<1x128xf32> to vector<32x128xf32>
    %27 = arith.mulf %26, %25 : vector<32x128xf32>
    %28 = vector.broadcast %9 : vector<1x128xf32> to vector<32x128xf32>
    %29 = arith.mulf %28, %0 : vector<32x128xf32>
    %30 = arith.addf %27, %29 : vector<32x128xf32>
    %cst_10 = arith.constant 0.000000e+00 : f32
    %31 = vector.broadcast %cst_10 : f32 to vector<32x128xf32>
    %32 = arith.maximumf %30, %31 : vector<32x128xf32>
    %c0_11 = arith.constant 0 : index
    %c0_12 = arith.constant 0 : index
    %33 = vector.load %arg1[%c0_11, %c0_12] : memref<464x128xf32, #tpu.memory_space<vmem>>, vector<128x128xf32>
    %cst_13 = arith.constant dense<0.000000e+00> : vector<32x128xf32>
    %34 = tpu.matmul %32, %33, %cst_13 {dimension_numbers = #tpu.dot_dimension_numbers<[1], [0], [0], [1], [0, 0, 1, 1], [], []>} : vector<32x128xf32>, vector<128x128xf32>, vector<32x128xf32> -> vector<32x128xf32>
    %c457 = arith.constant 457 : index
    %c0_14 = arith.constant 0 : index
    %35 = vector.load %arg1[%c457, %c0_14] : memref<464x128xf32, #tpu.memory_space<vmem>>, vector<1x128xf32>
    %36 = vector.broadcast %35 : vector<1x128xf32> to vector<32x128xf32>
    %37 = arith.addf %34, %36 : vector<32x128xf32>
    %c458 = arith.constant 458 : index
    %c0_15 = arith.constant 0 : index
    %38 = vector.load %arg1[%c458, %c0_15] : memref<464x128xf32, #tpu.memory_space<vmem>>, vector<1x128xf32>
    %c459 = arith.constant 459 : index
    %c0_16 = arith.constant 0 : index
    %39 = vector.load %arg1[%c459, %c0_16] : memref<464x128xf32, #tpu.memory_space<vmem>>, vector<1x128xf32>
    %40 = arith.mulf %37, %0 : vector<32x128xf32>
    %cst_17 = arith.constant dense<0.000000e+00> : vector<32xf32>
    %41 = vector.multi_reduction <add>, %40, %cst_17 [1] : vector<32x128xf32> to vector<32xf32>
    %42 = vector.shape_cast %41 : vector<32xf32> to vector<32x1xf32>
    %43 = vector.broadcast %42 : vector<32x1xf32> to vector<32x128xf32>
    %44 = arith.mulf %43, %1 : vector<32x128xf32>
    %45 = arith.subf %40, %44 : vector<32x128xf32>
    %46 = arith.mulf %45, %0 : vector<32x128xf32>
    %47 = arith.mulf %46, %46 : vector<32x128xf32>
    %cst_18 = arith.constant dense<0.000000e+00> : vector<32xf32>
    %48 = vector.multi_reduction <add>, %47, %cst_18 [1] : vector<32x128xf32> to vector<32xf32>
    %49 = vector.shape_cast %48 : vector<32xf32> to vector<32x1xf32>
    %50 = vector.broadcast %49 : vector<32x1xf32> to vector<32x128xf32>
    %51 = arith.mulf %50, %1 : vector<32x128xf32>
    %cst_19 = arith.constant 9.99999974E-6 : f32
    %52 = vector.broadcast %cst_19 : f32 to vector<32x128xf32>
    %53 = arith.addf %51, %52 : vector<32x128xf32>
    %54 = math.rsqrt %53 : vector<32x128xf32>
    %55 = arith.mulf %46, %54 : vector<32x128xf32>
    %56 = vector.broadcast %38 : vector<1x128xf32> to vector<32x128xf32>
    %57 = arith.mulf %56, %55 : vector<32x128xf32>
    %58 = vector.broadcast %39 : vector<1x128xf32> to vector<32x128xf32>
    %59 = arith.mulf %58, %0 : vector<32x128xf32>
    %60 = arith.addf %57, %59 : vector<32x128xf32>
    %cst_20 = arith.constant 0.000000e+00 : f32
    %61 = vector.broadcast %cst_20 : f32 to vector<32x128xf32>
    %62 = arith.maximumf %60, %61 : vector<32x128xf32>
    %c128 = arith.constant 128 : index
    %c0_21 = arith.constant 0 : index
    %63 = vector.load %arg1[%c128, %c0_21] : memref<464x128xf32, #tpu.memory_space<vmem>>, vector<128x128xf32>
    %cst_22 = arith.constant dense<0.000000e+00> : vector<32x128xf32>
    %64 = tpu.matmul %62, %63, %cst_22 {dimension_numbers = #tpu.dot_dimension_numbers<[1], [0], [0], [1], [0, 0, 1, 1], [], []>} : vector<32x128xf32>, vector<128x128xf32>, vector<32x128xf32> -> vector<32x128xf32>
    %c460 = arith.constant 460 : index
    %c0_23 = arith.constant 0 : index
    %65 = vector.load %arg1[%c460, %c0_23] : memref<464x128xf32, #tpu.memory_space<vmem>>, vector<1x128xf32>
    %66 = vector.broadcast %65 : vector<1x128xf32> to vector<32x128xf32>
    %67 = arith.addf %64, %66 : vector<32x128xf32>
    %c461 = arith.constant 461 : index
    %c0_24 = arith.constant 0 : index
    %68 = vector.load %arg1[%c461, %c0_24] : memref<464x128xf32, #tpu.memory_space<vmem>>, vector<1x128xf32>
    %c462 = arith.constant 462 : index
    %c0_25 = arith.constant 0 : index
    %69 = vector.load %arg1[%c462, %c0_25] : memref<464x128xf32, #tpu.memory_space<vmem>>, vector<1x128xf32>
    %70 = arith.mulf %67, %0 : vector<32x128xf32>
    %cst_26 = arith.constant dense<0.000000e+00> : vector<32xf32>
    %71 = vector.multi_reduction <add>, %70, %cst_26 [1] : vector<32x128xf32> to vector<32xf32>
    %72 = vector.shape_cast %71 : vector<32xf32> to vector<32x1xf32>
    %73 = vector.broadcast %72 : vector<32x1xf32> to vector<32x128xf32>
    %74 = arith.mulf %73, %1 : vector<32x128xf32>
    %75 = arith.subf %70, %74 : vector<32x128xf32>
    %76 = arith.mulf %75, %0 : vector<32x128xf32>
    %77 = arith.mulf %76, %76 : vector<32x128xf32>
    %cst_27 = arith.constant dense<0.000000e+00> : vector<32xf32>
    %78 = vector.multi_reduction <add>, %77, %cst_27 [1] : vector<32x128xf32> to vector<32xf32>
    %79 = vector.shape_cast %78 : vector<32xf32> to vector<32x1xf32>
    %80 = vector.broadcast %79 : vector<32x1xf32> to vector<32x128xf32>
    %81 = arith.mulf %80, %1 : vector<32x128xf32>
    %cst_28 = arith.constant 9.99999974E-6 : f32
    %82 = vector.broadcast %cst_28 : f32 to vector<32x128xf32>
    %83 = arith.addf %81, %82 : vector<32x128xf32>
    %84 = math.rsqrt %83 : vector<32x128xf32>
    %85 = arith.mulf %76, %84 : vector<32x128xf32>
    %86 = vector.broadcast %68 : vector<1x128xf32> to vector<32x128xf32>
    %87 = arith.mulf %86, %85 : vector<32x128xf32>
    %88 = vector.broadcast %69 : vector<1x128xf32> to vector<32x128xf32>
    %89 = arith.mulf %88, %0 : vector<32x128xf32>
    %90 = arith.addf %87, %89 : vector<32x128xf32>
    %cst_29 = arith.constant 0.000000e+00 : f32
    %91 = vector.broadcast %cst_29 : f32 to vector<32x128xf32>
    %92 = arith.maximumf %90, %91 : vector<32x128xf32>
    %c256 = arith.constant 256 : index
    %c0_30 = arith.constant 0 : index
    %93 = vector.load %arg1[%c256, %c0_30] : memref<464x128xf32, #tpu.memory_space<vmem>>, vector<128x128xf32>
    %cst_31 = arith.constant dense<0.000000e+00> : vector<32x128xf32>
    %94 = tpu.matmul %92, %93, %cst_31 {dimension_numbers = #tpu.dot_dimension_numbers<[1], [0], [0], [1], [0, 0, 1, 1], [], []>} : vector<32x128xf32>, vector<128x128xf32>, vector<32x128xf32> -> vector<32x128xf32>
    %c463 = arith.constant 463 : index
    %c0_32 = arith.constant 0 : index
    %95 = vector.load %arg1[%c463, %c0_32] : memref<464x128xf32, #tpu.memory_space<vmem>>, vector<1x128xf32>
    %96 = vector.broadcast %95 : vector<1x128xf32> to vector<32x128xf32>
    %97 = arith.addf %94, %96 : vector<32x128xf32>
    %c0_33 = arith.constant 0 : index
    %c0_34 = arith.constant 0 : index
    %98 = vector.load %arg2[%c0_33, %c0_34] : memref<32x128xf32, #tpu.memory_space<vmem>>, vector<32x128xf32>
    tpu.vector_store %arg2[%c0_33, %c0_34], %97 {strides = array<i32>} : memref<32x128xf32, #tpu.memory_space<vmem>>, vector<32x128xf32>,
    return
  }
}

</mosaic_0001>

<bundles_post_ra>
// kernel: slimnet_pallas.1
= control target key start
LH: loop header
LB: loop body
LE: loop exit
PB: predicated region body
PF: predicated region fallthrough
CT: control target
= control target key end

     0   :  { %7 = vsyncpa [#allocation3], 0  ;;  %s1071_s9 = smov [#allocation2]   ;;  %s1261_s0 = inlined_call_operand.vmem [shape: f32[32,6], index: 0, kind: input, shape index: {}]   ;;  %s1262_s1 = inlined_call_operand.hbm [shape: f32[464,128], index: 1, kind: input, shape index: {}]   ;;  %s1263_s2 = inlined_call_operand.vmem [shape: f32[32,128], index: 2, kind: output, shape index: {}]  }
   0x1   :  { %s15_s10 = sshll.u32 %s1071_s9, 4  ;;  %s1047_s13 = scalar_lea.hbm %s1262_s1, 7424  ;;  %s16_s10 = int_to_ptr.vmem [resolvable:$true] %s15_s10 }
   0x2   :  { %p1048_p0 = scmp.ne.s32.totalorder %s1262_s1, %s1047_s13  ;;  %p1051_p1 = scmp.lt.u32.totalorder %s1047_s13, %s1262_s1 }
   0x4   :  { %p1053_p2 = pnand %p1051_p1, %p1048_p0 }
   0x6   :  { %1056 = shalt.err (!%p1053_p2)
}
   0x7   :  { %s1057_s18 = scalar_lea.vmem %s16_s10, 7424  ;;  %p1062_p4 = scmp.lt.s32.totalorder %s16_s10, %s16_s10 }
   0x8   :  { %p1058_p3 = scmp.ne.s32.totalorder %s16_s10, %s1057_s18  ;;  %p1063_p5 = scmp.lt.s32.totalorder %s1057_s18, %s1057_s18 }
   0xa   :  { %p1064_p6 = por %p1063_p5, %p1062_p4 }
   0xc   :  { %p1065_p7 = pnand %p1064_p6, %p1058_p3 }
   0xe   :  { %1068 = shalt.err (!%p1065_p7)
}
   0xf   :  { %s1072_s19 = smov 128   ;;  %s1073_s20 = smov 8  }
  0x10   :  { %21 = dma.hbm_to_vmem [thread:$0]  %s1262_s1, 7424, %s16_s10, [#allocation3], %s1072_s19, %s1072_s19, %s1073_s20  }
  0x11   :  { %1069 = dma.done.wait [#allocation3], 7424  }
  0x12   :  { %1070 = vsyncadd [#allocation3], 4294959872  ;;  %vm56_vm0 = vcmask 1045504   ;;  %vm43_vm1 = vcmask 48128   ;;  %v37_v0 = vld [vmem:[#allocation2 + $0x1c0] sm:$0x3f] }
  0x13   :  { %v33_v1 = vld [vmem:[%s1261_s0] sm:$0xff]  ;;  %v34_v2 = vld [vmem:[%s1261_s0 + $0x8] sm:$0xff]  ;;  %786 = vmatprep.subr.msk.mxu0 %vm56_vm0, %v37_v0  ;;  %v35_v3 = vld [vmem:[%s1261_s0 + $0x10] sm:$0xff] }
  0x14   :  { %788 = vmatprep.mubr.msk.f32.mxu0 %vm43_vm1, %v33_v1  ;;  %787 = vmatpush3.msk.msra.mxu0 %vm56_vm0, %v37_v0  ;;  %v36_v4 = vld [vmem:[%s1261_s0 + $0x18] sm:$0xff]  ;;  %v706_v5 = vld [vmem:[#allocation2 + $0x1c6] ss:$0 sm:$0xff]  ;;  %v1116_v14 = vld [vmem:[#allocation2 + $0x190] sm:$0xff] }
  0x15   :  { %789 = vmatmul.mubr.msk.f32.vlgmr.msra.gmra.mrb[0].mxu0 %vm43_vm1, %v34_v2  ;;  %v1113_v8 = vld [vmem:[#allocation2 + $0x180] sm:$0xff]  ;;  %v1118_v15 = vld [vmem:[#allocation2 + $0x188] sm:$0xff]  ;;  %v1122_v20 = vld [vmem:[#allocation2 + $0x198] sm:$0xff] }
  0x16   :  { %791 = vmatprep.mubr.msk.f32.mxu0 %vm43_vm1, %v35_v3  ;;  %v223_v22 = vld [vmem:[#allocation2] sm:$0xff]  ;;  %v224_v23 = vld [vmem:[#allocation2 + $0x8] sm:$0xff]  ;;  %v225_v24 = vld [vmem:[#allocation2 + $0x10] sm:$0xff] }
  0x17   :  { %v908_v25 = vpack.c.bf16 %v224_v23, %v223_v22  ;;  %v226_v26 = vld [vmem:[#allocation2 + $0x18] sm:$0xff]  ;;  %v1125_v28 = vld [vmem:[#allocation2 + $0x1a0] sm:$0xff]  ;;  %v1128_v31 = vld [vmem:[#allocation2 + $0x1b0] sm:$0xff] }
  0x18   :  { %v912_v27 = vpack.c.bf16 %v226_v26, %v225_v24  ;;  %v1130_v32 = vld [vmem:[#allocation2 + $0x1a8] sm:$0xff]  ;;  %v1137_v39 = vld [vmem:[#allocation2 + $0x1b8] sm:$0xff]  ;;  %v227_v52 = vld [vmem:[#allocation2 + $0x20] sm:$0xff] }
  0x19   :  { %792 = vmatmul.mubr.msk.f32.gmra.mrb[2].mxu0 %vm43_vm1, %v36_v4  ;;  %909 = vmatprep.subr.bf16.mxu1 %v908_v25  ;;  %v228_v53 = vld [vmem:[#allocation2 + $0x28] sm:$0xff]  ;;  %v229_v55 = vld [vmem:[#allocation2 + $0x30] sm:$0xff]  ;;  %v230_v56 = vld [vmem:[#allocation2 + $0x38] sm:$0xff] }
  0x1a   :  { %911 = vmatpush3.bf16.msra.mxu1 %v908_v25  ;;  %v916_v54 = vpack.c.bf16 %v228_v53, %v227_v52  ;;  %v920_v57 = vpack.c.bf16 %v230_v56, %v229_v55  ;;  %v231_v58 = vld [vmem:[#allocation2 + $0x40] sm:$0xff]  ;;  %v232_v59 = vld [vmem:[#allocation2 + $0x48] sm:$0xff]  ;;  %v233_v61 = vld [vmem:[#allocation2 + $0x50] sm:$0xff] }
  0x1b   :  { %913 = vmatprep.subr.bf16.mxu1 %v912_v27  ;;  %v924_v60 = vpack.c.bf16 %v232_v59, %v231_v58  ;;  %v234_v62 = vld [vmem:[#allocation2 + $0x58] sm:$0xff]  ;;  %v235_v63 = vld [vmem:[#allocation2 + $0x60] sm:$0xff]  ;;  %v236_v1 = vld [vmem:[#allocation2 + $0x68] sm:$0xff] }
  0x1c   :  { %v928_v0 = vpack.c.bf16 %v234_v62, %v233_v61  ;;  %v932_v2 = vpack.c.bf16 %v236_v1, %v235_v63  ;;  %v237_v3 = vld [vmem:[#allocation2 + $0x70] sm:$0xff]  ;;  %v238_v4 = vld [vmem:[#allocation2 + $0x78] sm:$0xff]  ;;  %v713_v22 = vld [vmem:[#allocation2 + $0x1c8] ss:$0 sm:$0xff] }
  0x1d   :  { %v712_v24 = vld [vmem:[#allocation2 + $0x1c7] ss:$0 sm:$0xff]  ;;  %v211_v26 = vmul.f32 %v713_v22, %v1113_v8  ;;  %v714_v53 = vld [vmem:[#allocation2 + $0x1c9] ss:$0 sm:$0xff] }
  0x1e   :  { %915 = vmatpush3.bf16.msra.mxu1 %v912_v27  ;;  %v407_v1 = vld [vmem:[#allocation2 + $0x80] sm:$0xff] }
  0x1f   :  { %917 = vmatprep.subr.bf16.mxu1 %v916_v54 }
  0x22   :  { %919 = vmatpush3.bf16.msra.mxu1 %v916_v54 }
  0x23   :  { %921 = vmatprep.subr.bf16.mxu1 %v920_v57 }
  0x26   :  { %923 = vmatpush3.bf16.msra.mxu1 %v920_v57 }
  0x27   :  { %925 = vmatprep.subr.bf16.mxu1 %v924_v60 }
  0x2a   :  { %927 = vmatpush3.bf16.msra.mxu1 %v924_v60 }
  0x2b   :  { %929 = vmatprep.subr.bf16.mxu1 %v928_v0 }
  0x2e   :  { %931 = vmatpush3.bf16.msra.mxu1 %v928_v0 }
  0x2f   :  { %933 = vmatprep.subr.bf16.mxu1 %v932_v2 }
  0x32   :  { %935 = vmatpush3.bf16.msra.mxu1 %v932_v2  ;;  %v408_v2 = vld [vmem:[#allocation2 + $0x88] sm:$0xff] }
  0xe8   :  { %v790_v6 = vpop.f32.mrb[0].mxu0 }
  0xe9   :  { %v126_v7 = vpop.f32.mrb[1].mxu0  ;;  %v132_v10 = vadd.f32 %v790_v6, %v706_v5 }
  0xea   :  { %v127_v9 = vadd.f32 %v706_v5, %v126_v7 }
  0xeb   :  { %v148_v19 = vmul.f32 %v132_v10, %v1118_v15 }
  0xec   :  { %v793_v11 = vpop.f32.mrb[2].mxu0  ;;  %v147_v12 = vmul.f32 %v127_v9, %v1113_v8 }
  0xed   :  { %v136_v13 = vpop.f32.mrb[3].mxu0  ;;  %v142_v17 = vadd.f32 %v793_v11, %v706_v5 }
  0xee   :  { %v137_v16 = vadd.f32 %v706_v5, %v136_v13  ;;  %151 = vadd.xlane.f32.xlu0 %v147_v12  ;;  %v936_v5 = vpack.c.bf16 %v238_v4, %v237_v3  ;;  %v409_v3 = vld [vmem:[#allocation2 + $0x90] sm:$0xff]  ;;  %v940_v4 = vpack.c.bf16 %v408_v2, %v407_v1  ;;  %v716_v1 = vld [vmem:[#allocation2 + $0x1cb] ss:$0 sm:$0xff] }
  0xef   :  { %v150_v21 = vmul.f32 %v142_v17, %v1122_v20 }
  0xf0   :  { %v149_v18 = vmul.f32 %v137_v16, %v1116_v14  ;;  %937 = vmatprep.subr.bf16.mxu1 %v936_v5  ;;  %941 = vmatprep.subr.bf16.mxu0 %v940_v4 }
  0xf1   :  { %939 = vmatpush3.bf16.msra.mxu1 %v936_v5  ;;  %v410_v5 = vld [vmem:[#allocation2 + $0x98] sm:$0xff]  ;;  %943 = vmatpush3.bf16.msra.mxu0 %v940_v4 }
  0xf2   :  { %155 = vadd.xlane.f32.xlu1 %v149_v18  ;;  %153 = vadd.xlane.f32.xlu0 %v148_v19 }
  0xf6   :  { %157 = vadd.xlane.f32.xlu1 %v150_v21 }
 0x17b   :  { %v152_v29 = vpop.xlane.xlu0 %151 }
 0x17c   :  { %v159_v30 = vmul.f32 %v152_v29, %v1125_v28 }
 0x17e   :  { %v163_v33 = vsub.f32 %v147_v12, %v159_v30 }
 0x17f   :  { %v156_v34 = vpop.xlane.xlu1 %155  ;;  %v154_v35 = vpop.xlane.xlu0 %153 }
 0x180   :  { %v161_v36 = vmul.f32 %v156_v34, %v1128_v31  ;;  %v160_v37 = vmul.f32 %v154_v35, %v1130_v32  ;;  %v1135_v38 = vmul.f32 %v163_v33, %v1113_v8  ;;  %v212_v35 = vmul.f32 %v713_v22, %v1118_v15 }
 0x182   :  { %v165_v40 = vsub.f32 %v149_v18, %v161_v36  ;;  %v164_v41 = vsub.f32 %v148_v19, %v160_v37  ;;  %v171_v42 = vmul.f32 %v1135_v38, %v1135_v38  ;;  %v213_v37 = vmul.f32 %v713_v22, %v1116_v14 }
 0x183   :  { %v158_v43 = vpop.xlane.xlu1 %157 }
 0x184   :  { %v162_v44 = vmul.f32 %v158_v43, %v1137_v39  ;;  %175 = vadd.xlane.f32.xlu0 %v171_v42  ;;  %v1143_v45 = vmul.f32 %v165_v40, %v1116_v14  ;;  %v1146_v46 = vmul.f32 %v164_v41, %v1118_v15 }
 0x186   :  { %v166_v47 = vsub.f32 %v150_v21, %v162_v44  ;;  %v173_v48 = vmul.f32 %v1143_v45, %v1143_v45  ;;  %v172_v49 = vmul.f32 %v1146_v46, %v1146_v46 }
 0x188   :  { %179 = vadd.xlane.f32.xlu0 %v173_v48  ;;  %177 = vadd.xlane.f32.xlu1 %v172_v49  ;;  %v1153_v50 = vmul.f32 %v166_v47, %v1122_v20  ;;  %v214_v47 = vmul.f32 %v713_v22, %v1122_v20 }
 0x18a   :  { %v174_v51 = vmul.f32 %v1153_v50, %v1153_v50 }
 0x18c   :  { %181 = vadd.xlane.f32.xlu1 %v174_v51 }
 0x211   :  { %v176_v6 = vpop.xlane.xlu0 %175 }
 0x212   :  { %v183_v7 = vmul.f32 %v176_v6, %v1125_v28  ;;  %v944_v6 = vpack.c.bf16 %v410_v5, %v409_v3  ;;  %v715_v3 = vld [vmem:[#allocation2 + $0x1ca] ss:$0 sm:$0xff] }
 0x214   :  { %v187_v9 = vadd.f32 1e-05, %v183_v7  ;;  %945 = vmatprep.subr.bf16.mxu0 %v944_v6 }
 0x215   :  { %v178_v10 = vpop.xlane.xlu1 %177  ;;  %v180_v11 = vpop.xlane.xlu0 %179  ;;  %947 = vmatpush3.bf16.msra.mxu0 %v944_v6  ;;  %v396_v6 = vmul.f32 %v716_v1, %v1118_v15 }
 0x216   :  { %1023 = vrsqrt.f32 %v187_v9  ;;  %v184_v12 = vmul.f32 %v178_v10, %v1130_v32  ;;  %v185_v13 = vmul.f32 %v180_v11, %v1128_v31 }
 0x218   :  { %v188_v16 = vadd.f32 1e-05, %v184_v12  ;;  %v189_v17 = vadd.f32 1e-05, %v185_v13 }
 0x219   :  { %v182_v18 = vpop.xlane.xlu1 %181 }
 0x21a   :  { %1025 = vrsqrt.f32 %v188_v16  ;;  %v186_v19 = vmul.f32 %v182_v18, %v1137_v39 }
 0x21b   :  { %1027 = vrsqrt.f32 %v189_v17 }
 0x21c   :  { %v190_v21 = vadd.f32 1e-05, %v186_v19 }
 0x21e   :  { %1029 = vrsqrt.f32 %v190_v21 }
 0x220   :  { %v1024_v23 = vpop.eup %1023 }
 0x221   :  { %v195_v25 = vmul.f32 %v1024_v23, %v1135_v38 }
 0x223   :  { %v203_v27 = vmul.f32 %v712_v24, %v195_v25 }
 0x224   :  { %v1026_v29 = vpop.eup %1025 }
 0x225   :  { %v1028_v30 = vpop.eup %1027  ;;  %v215_v33 = vadd.f32 %v211_v26, %v203_v27  ;;  %v196_v34 = vmul.f32 %v1026_v29, %v1146_v46 }
 0x226   :  { %v197_v36 = vmul.f32 %v1028_v30, %v1143_v45 }
 0x227   :  { %v219_v40 = vmax.f32 %v215_v33, 0.0  ;;  %v204_v41 = vmul.f32 %v712_v24, %v196_v34  ;;  %v411_v34 = vld [vmem:[#allocation2 + $0xa0] sm:$0xff] }
 0x228   :  { %v1030_v42 = vpop.eup %1029  ;;  %v205_v43 = vmul.f32 %v712_v24, %v197_v36 }
 0x229   :  { %826 = vmatprep.mubr.f32.mxu1 %v219_v40  ;;  %v216_v38 = vadd.f32 %v212_v35, %v204_v41  ;;  %v198_v44 = vmul.f32 %v1030_v42, %v1153_v50  ;;  %v412_v35 = vld [vmem:[#allocation2 + $0xa8] sm:$0xff]  ;;  %v414_v40 = vld [vmem:[#allocation2 + $0xb8] sm:$0xff]  ;;  %v415_v42 = vld [vmem:[#allocation2 + $0xc0] sm:$0xff] }
 0x22a   :  { %v217_v48 = vadd.f32 %v213_v37, %v205_v43  ;;  %v948_v36 = vpack.c.bf16 %v412_v35, %v411_v34  ;;  %v413_v37 = vld [vmem:[#allocation2 + $0xb0] sm:$0xff]  ;;  %v416_v43 = vld [vmem:[#allocation2 + $0xc8] sm:$0xff] }
 0x22b   :  { %v220_v49 = vmax.f32 %v216_v38, 0.0  ;;  %v206_v51 = vmul.f32 %v712_v24, %v198_v44  ;;  %v952_v41 = vpack.c.bf16 %v414_v40, %v413_v37  ;;  %v956_v38 = vpack.c.bf16 %v416_v43, %v415_v42  ;;  %v417_v44 = vld [vmem:[#allocation2 + $0xd0] sm:$0xff] }
 0x22c   :  { %v221_v46 = vmax.f32 %v217_v48, 0.0  ;;  %949 = vmatprep.subr.bf16.mxu0 %v948_v36 }
 0x22d   :  { %827 = vmatmul.mubr.f32.vlgmr.msra.gmra.mrb[0].mxu1 %v220_v49  ;;  %v218_v52 = vadd.f32 %v214_v47, %v206_v51  ;;  %951 = vmatpush3.bf16.msra.mxu0 %v948_v36  ;;  %v418_v47 = vld [vmem:[#allocation2 + $0xd8] sm:$0xff]  ;;  %v419_v49 = vld [vmem:[#allocation2 + $0xe0] sm:$0xff]  ;;  %v420_v51 = vld [vmem:[#allocation2 + $0xe8] sm:$0xff] }
 0x22e   :  { %829 = vmatprep.mubr.f32.mxu1 %v221_v46  ;;  %953 = vmatprep.subr.bf16.mxu0 %v952_v41  ;;  %v960_v48 = vpack.c.bf16 %v418_v47, %v417_v44  ;;  %v421_v46 = vld [vmem:[#allocation2 + $0xf0] sm:$0xff] }
 0x22f   :  { %v222_v45 = vmax.f32 %v218_v52, 0.0  ;;  %v964_v52 = vpack.c.bf16 %v420_v51, %v419_v49  ;;  %v591_v51 = vld [vmem:[#allocation2 + $0x100] sm:$0xff] }
 0x231   :  { %830 = vmatmul.mubr.f32.gmra.mrb[2].mxu1 %v222_v45  ;;  %955 = vmatpush3.bf16.msra.mxu0 %v952_v41  ;;  %v422_v45 = vld [vmem:[#allocation2 + $0xf8] sm:$0xff] }
 0x232   :  { %957 = vmatprep.subr.bf16.mxu0 %v956_v38 }
 0x235   :  { %959 = vmatpush3.bf16.msra.mxu0 %v956_v38 }
 0x236   :  { %961 = vmatprep.subr.bf16.mxu0 %v960_v48 }
 0x239   :  { %963 = vmatpush3.bf16.msra.mxu0 %v960_v48 }
 0x23a   :  { %965 = vmatprep.subr.bf16.mxu0 %v964_v52 }
 0x23d   :  { %967 = vmatpush3.bf16.msra.mxu0 %v964_v52  ;;  %v593_v52 = vld [vmem:[#allocation2 + $0x110] sm:$0xff] }
 0x300   :  { %v828_v54 = vpop.f32.mrb[0].mxu1 }
 0x301   :  { %v316_v55 = vadd.f32 %v828_v54, %v714_v53  ;;  %v310_v56 = vpop.f32.mrb[1].mxu1 }
 0x302   :  { %v311_v57 = vadd.f32 %v714_v53, %v310_v56 }
 0x303   :  { %v332_v58 = vmul.f32 %v316_v55, %v1118_v15 }
 0x304   :  { %v831_v59 = vpop.f32.mrb[2].mxu1  ;;  %v331_v50 = vmul.f32 %v311_v57, %v1113_v8 }
 0x305   :  { %v326_v60 = vadd.f32 %v831_v59, %v714_v53  ;;  %337 = vadd.xlane.f32.xlu1 %v332_v58  ;;  %v320_v61 = vpop.f32.mrb[3].mxu1 }
 0x306   :  { %v321_v62 = vadd.f32 %v714_v53, %v320_v61  ;;  %335 = vadd.xlane.f32.xlu0 %v331_v50  ;;  %v968_v53 = vpack.c.bf16 %v422_v45, %v421_v46  ;;  %v592_v46 = vld [vmem:[#allocation2 + $0x108] sm:$0xff] }
 0x307   :  { %v334_v63 = vmul.f32 %v326_v60, %v1122_v20  ;;  %v972_v45 = vpack.c.bf16 %v592_v46, %v591_v51  ;;  %v719_v51 = vld [vmem:[#allocation2 + $0x1ce] ss:$0 sm:$0xff] }
 0x308   :  { %v333_v0 = vmul.f32 %v321_v62, %v1116_v14  ;;  %969 = vmatprep.subr.bf16.mxu0 %v968_v53 }
 0x309   :  { %341 = vadd.xlane.f32.xlu1 %v334_v63  ;;  %971 = vmatpush3.bf16.msra.mxu0 %v968_v53  ;;  %v594_v53 = vld [vmem:[#allocation2 + $0x118] sm:$0xff] }
 0x30a   :  { %339 = vadd.xlane.f32.xlu0 %v333_v0  ;;  %973 = vmatprep.subr.bf16.mxu0 %v972_v45 }
 0x30b   :  { %1004 = vmatprep.subr.bf16.mxu1 %v972_v45 }
 0x30c   :  { %1012 = vmatpush3.bf16.msra.mxu1 %v972_v45 }
 0x392   :  { %v338_v7 = vpop.xlane.xlu1 %337 }
 0x393   :  { %v344_v9 = vmul.f32 %v338_v7, %v1130_v32  ;;  %v336_v10 = vpop.xlane.xlu0 %335 }
 0x394   :  { %v343_v11 = vmul.f32 %v336_v10, %v1125_v28 }
 0x395   :  { %v348_v12 = vsub.f32 %v332_v58, %v344_v9  ;;  %v395_v9 = vmul.f32 %v716_v1, %v1113_v8 }
 0x396   :  { %v347_v13 = vsub.f32 %v331_v50, %v343_v11  ;;  %v342_v16 = vpop.xlane.xlu1 %341 }
 0x397   :  { %v346_v17 = vmul.f32 %v342_v16, %v1137_v39  ;;  %v340_v18 = vpop.xlane.xlu0 %339  ;;  %v1177_v19 = vmul.f32 %v348_v12, %v1118_v15 }
 0x398   :  { %v345_v21 = vmul.f32 %v340_v18, %v1128_v31  ;;  %v1181_v22 = vmul.f32 %v347_v13, %v1113_v8  ;;  %v398_v18 = vmul.f32 %v716_v1, %v1122_v20 }
 0x399   :  { %v350_v23 = vsub.f32 %v334_v63, %v346_v17  ;;  %v356_v24 = vmul.f32 %v1177_v19, %v1177_v19 }
 0x39a   :  { %v349_v25 = vsub.f32 %v333_v0, %v345_v21  ;;  %v355_v26 = vmul.f32 %v1181_v22, %v1181_v22 }
 0x39b   :  { %361 = vadd.xlane.f32.xlu1 %v356_v24  ;;  %v1188_v27 = vmul.f32 %v350_v23, %v1122_v20 }
 0x39c   :  { %359 = vadd.xlane.f32.xlu0 %v355_v26  ;;  %v1191_v29 = vmul.f32 %v349_v25, %v1116_v14 }
 0x39d   :  { %v358_v30 = vmul.f32 %v1188_v27, %v1188_v27 }
 0x39e   :  { %v357_v33 = vmul.f32 %v1191_v29, %v1191_v29 }
 0x39f   :  { %365 = vadd.xlane.f32.xlu1 %v358_v30 }
 0x3a0   :  { %363 = vadd.xlane.f32.xlu0 %v357_v33 }
 0x428   :  { %v362_v54 = vpop.xlane.xlu1 %361 }
 0x429   :  { %v368_v55 = vmul.f32 %v362_v54, %v1130_v32  ;;  %v360_v56 = vpop.xlane.xlu0 %359  ;;  %v976_v54 = vpack.c.bf16 %v594_v53, %v593_v52 }
 0x42a   :  { %v367_v57 = vmul.f32 %v360_v56, %v1125_v28 }
 0x42b   :  { %v372_v58 = vadd.f32 1e-05, %v368_v55  ;;  %1005 = vmatprep.subr.bf16.mxu1 %v976_v54 }
 0x42c   :  { %v371_v59 = vadd.f32 1e-05, %v367_v57  ;;  %v366_v50 = vpop.xlane.xlu1 %365  ;;  %1013 = vmatpush3.bf16.msra.mxu1 %v976_v54 }
 0x42d   :  { %1031 = vrsqrt.f32 %v372_v58  ;;  %v370_v60 = vmul.f32 %v366_v50, %v1137_v39  ;;  %v364_v61 = vpop.xlane.xlu0 %363 }
 0x42e   :  { %1033 = vrsqrt.f32 %v371_v59  ;;  %v369_v62 = vmul.f32 %v364_v61, %v1128_v31 }
 0x42f   :  { %v374_v63 = vadd.f32 1e-05, %v370_v60 }
 0x430   :  { %v373_v0 = vadd.f32 1e-05, %v369_v62 }
 0x431   :  { %1035 = vrsqrt.f32 %v374_v63 }
 0x432   :  { %1037 = vrsqrt.f32 %v373_v0 }
 0x437   :  { %v1032_v2 = vpop.eup %1031 }
 0x438   :  { %v1034_v4 = vpop.eup %1033  ;;  %v380_v5 = vmul.f32 %v1032_v2, %v1177_v19  ;;  %v397_v19 = vmul.f32 %v716_v1, %v1116_v14 }
 0x439   :  { %v379_v7 = vmul.f32 %v1034_v4, %v1181_v22 }
 0x43a   :  { %v388_v10 = vmul.f32 %v715_v3, %v380_v5 }
 0x43b   :  { %v1036_v11 = vpop.eup %1035  ;;  %v387_v12 = vmul.f32 %v715_v3, %v379_v7 }
 0x43c   :  { %v1038_v13 = vpop.eup %1037  ;;  %v400_v16 = vadd.f32 %v396_v6, %v388_v10  ;;  %v382_v17 = vmul.f32 %v1036_v11, %v1188_v27  ;;  %v717_v27 = vld [vmem:[#allocation2 + $0x1cc] ss:$0 sm:$0xff]  ;;  %v595_v11 = vld [vmem:[#allocation2 + $0x120] sm:$0xff] }
 0x43d   :  { %v399_v21 = vadd.f32 %v395_v9, %v387_v12  ;;  %v381_v23 = vmul.f32 %v1038_v13, %v1191_v29  ;;  %v596_v12 = vld [vmem:[#allocation2 + $0x128] sm:$0xff] }
 0x43e   :  { %v390_v24 = vmul.f32 %v715_v3, %v382_v17  ;;  %v404_v22 = vmax.f32 %v400_v16, 0.0  ;;  %v980_v13 = vpack.c.bf16 %v596_v12, %v595_v11  ;;  %v597_v16 = vld [vmem:[#allocation2 + $0x130] sm:$0xff]  ;;  %v598_v17 = vld [vmem:[#allocation2 + $0x138] sm:$0xff] }
 0x43f   :  { %v403_v25 = vmax.f32 %v399_v21, 0.0  ;;  %v389_v26 = vmul.f32 %v715_v3, %v381_v23  ;;  %v599_v21 = vld [vmem:[#allocation2 + $0x140] sm:$0xff]  ;;  %v600_v23 = vld [vmem:[#allocation2 + $0x148] sm:$0xff] }
 0x440   :  { %v402_v30 = vadd.f32 %v398_v18, %v390_v24  ;;  %1006 = vmatprep.subr.bf16.mxu1 %v980_v13  ;;  %v984_v18 = vpack.c.bf16 %v598_v17, %v597_v16  ;;  %v601_v24 = vld [vmem:[#allocation2 + $0x150] sm:$0xff] }
 0x441   :  { %864 = vmatprep.mubr.f32.mxu0 %v403_v25  ;;  %v401_v33 = vadd.f32 %v397_v19, %v389_v26  ;;  %1014 = vmatpush3.bf16.msra.mxu1 %v980_v13  ;;  %v988_v19 = vpack.c.bf16 %v600_v23, %v599_v21  ;;  %v602_v25 = vld [vmem:[#allocation2 + $0x158] sm:$0xff] }
 0x442   :  { %865 = vmatmul.mubr.f32.vlgmr.msra.gmra.mrb[4].mxu0 %v404_v22  ;;  %v406_v35 = vmax.f32 %v402_v30, 0.0  ;;  %1007 = vmatprep.subr.bf16.mxu1 %v984_v18  ;;  %v992_v26 = vpack.c.bf16 %v602_v25, %v601_v24  ;;  %v603_v22 = vld [vmem:[#allocation2 + $0x160] sm:$0xff]  ;;  %v604_v30 = vld [vmem:[#allocation2 + $0x168] sm:$0xff] }
 0x443   :  { %v405_v34 = vmax.f32 %v401_v33, 0.0  ;;  %975 = vmatpush3.bf16.msra.mxu0 %v972_v45  ;;  %v996_v33 = vpack.c.bf16 %v604_v30, %v603_v22  ;;  %v579_v45 = vmul.f32 %v719_v51, %v1113_v8 }
 0x444   :  { %977 = vmatprep.subr.bf16.mxu0 %v976_v54 }
 0x445   :  { %867 = vmatprep.mubr.f32.mxu0 %v405_v34  ;;  %1015 = vmatpush3.bf16.msra.mxu1 %v984_v18  ;;  %v605_v34 = vld [vmem:[#allocation2 + $0x170] sm:$0xff] }
 0x446   :  { %868 = vmatmul.mubr.f32.gmra.mrb[6].mxu0 %v406_v35  ;;  %1008 = vmatprep.subr.bf16.mxu1 %v988_v19  ;;  %v606_v35 = vld [vmem:[#allocation2 + $0x178] sm:$0xff] }
 0x447   :  { %979 = vmatpush3.bf16.msra.mxu0 %v976_v54 }
 0x448   :  { %981 = vmatprep.subr.bf16.mxu0 %v980_v13 }
 0x449   :  { %1016 = vmatpush3.bf16.msra.mxu1 %v988_v19 }
 0x44a   :  { %1009 = vmatprep.subr.bf16.mxu1 %v992_v26 }
 0x44b   :  { %983 = vmatpush3.bf16.msra.mxu0 %v980_v13 }
 0x44c   :  { %985 = vmatprep.subr.bf16.mxu0 %v984_v18 }
 0x44d   :  { %1017 = vmatpush3.bf16.msra.mxu1 %v992_v26 }
 0x44e   :  { %1010 = vmatprep.subr.bf16.mxu1 %v996_v33 }
 0x44f   :  { %987 = vmatpush3.bf16.msra.mxu0 %v984_v18 }
 0x450   :  { %989 = vmatprep.subr.bf16.mxu0 %v988_v19 }
 0x451   :  { %1018 = vmatpush3.bf16.msra.mxu1 %v996_v33 }
 0x453   :  { %991 = vmatpush3.bf16.msra.mxu0 %v988_v19 }
 0x454   :  { %993 = vmatprep.subr.bf16.mxu0 %v992_v26 }
 0x457   :  { %995 = vmatpush3.bf16.msra.mxu0 %v992_v26 }
 0x458   :  { %997 = vmatprep.subr.bf16.mxu0 %v996_v33 }
 0x45b   :  { %999 = vmatpush3.bf16.msra.mxu0 %v996_v33 }
 0x515   :  { %v866_v36 = vpop.f32.mrb[4].mxu0 }
 0x516   :  { %v494_v37 = vpop.f32.mrb[5].mxu0  ;;  %v500_v41 = vadd.f32 %v866_v36, %v717_v27 }
 0x517   :  { %v495_v40 = vadd.f32 %v717_v27, %v494_v37 }
 0x518   :  { %v516_v47 = vmul.f32 %v500_v41, %v1118_v15 }
 0x519   :  { %v869_v29 = vpop.f32.mrb[6].mxu0  ;;  %v515_v42 = vmul.f32 %v495_v40, %v1113_v8 }
 0x51a   :  { %v504_v43 = vpop.f32.mrb[7].mxu0  ;;  %v510_v44 = vadd.f32 %v869_v29, %v717_v27 }
 0x51b   :  { %v505_v38 = vadd.f32 %v717_v27, %v504_v43  ;;  %519 = vadd.xlane.f32.xlu0 %v515_v42  ;;  %v1000_v27 = vpack.c.bf16 %v606_v35, %v605_v34 }
 0x51c   :  { %v518_v49 = vmul.f32 %v510_v44, %v1122_v20 }
 0x51d   :  { %v517_v48 = vmul.f32 %v505_v38, %v1116_v14  ;;  %1001 = vmatprep.subr.bf16.mxu0 %v1000_v27  ;;  %1011 = vmatprep.subr.bf16.mxu1 %v1000_v27 }
 0x51e   :  { %1003 = vmatpush3.bf16.msra.mxu0 %v1000_v27  ;;  %1019 = vmatpush3.bf16.msra.mxu1 %v1000_v27 }
 0x51f   :  { %521 = vadd.xlane.f32.xlu0 %v516_v47  ;;  %523 = vadd.xlane.f32.xlu1 %v517_v48 }
 0x523   :  { %525 = vadd.xlane.f32.xlu1 %v518_v49 }
 0x5a8   :  { %v520_v55 = vpop.xlane.xlu0 %519 }
 0x5a9   :  { %v527_v56 = vmul.f32 %v520_v55, %v1125_v28 }
 0x5ab   :  { %v531_v57 = vsub.f32 %v515_v42, %v527_v56  ;;  %v581_v56 = vmul.f32 %v719_v51, %v1116_v14 }
 0x5ac   :  { %v524_v58 = vpop.xlane.xlu1 %523  ;;  %v522_v59 = vpop.xlane.xlu0 %521 }
 0x5ad   :  { %v529_v50 = vmul.f32 %v524_v58, %v1128_v31  ;;  %v528_v60 = vmul.f32 %v522_v59, %v1130_v32  ;;  %v1217_v61 = vmul.f32 %v531_v57, %v1113_v8  ;;  %v580_v57 = vmul.f32 %v719_v51, %v1118_v15 }
 0x5af   :  { %v533_v62 = vsub.f32 %v517_v48, %v529_v50  ;;  %v532_v63 = vsub.f32 %v516_v47, %v528_v60  ;;  %v539_v0 = vmul.f32 %v1217_v61, %v1217_v61 }
 0x5b0   :  { %v526_v1 = vpop.xlane.xlu1 %525 }
 0x5b1   :  { %v530_v2 = vmul.f32 %v526_v1, %v1137_v39  ;;  %543 = vadd.xlane.f32.xlu0 %v539_v0  ;;  %v1223_v3 = vmul.f32 %v533_v62, %v1116_v14  ;;  %v1226_v4 = vmul.f32 %v532_v63, %v1118_v15  ;;  %v582_v62 = vmul.f32 %v719_v51, %v1122_v20  ;;  %v720_v15 = vld [vmem:[#allocation2 + $0x1cf] ss:$0 sm:$0xff] }
 0x5b3   :  { %v534_v5 = vsub.f32 %v518_v49, %v530_v2  ;;  %v541_v6 = vmul.f32 %v1223_v3, %v1223_v3  ;;  %v540_v7 = vmul.f32 %v1226_v4, %v1226_v4 }
 0x5b5   :  { %547 = vadd.xlane.f32.xlu1 %v541_v6  ;;  %545 = vadd.xlane.f32.xlu0 %v540_v7  ;;  %v1233_v9 = vmul.f32 %v534_v5, %v1122_v20 }
 0x5b7   :  { %v542_v10 = vmul.f32 %v1233_v9, %v1233_v9 }
 0x5b9   :  { %549 = vadd.xlane.f32.xlu1 %v542_v10 }
 0x63e   :  { %v544_v36 = vpop.xlane.xlu0 %543 }
 0x63f   :  { %v551_v37 = vmul.f32 %v544_v36, %v1125_v28  ;;  %v718_v28 = vld [vmem:[#allocation2 + $0x1cd] ss:$0 sm:$0xff] }
 0x641   :  { %v555_v40 = vadd.f32 1e-05, %v551_v37 }
 0x642   :  { %v548_v41 = vpop.xlane.xlu1 %547  ;;  %v546_v29 = vpop.xlane.xlu0 %545 }
 0x643   :  { %1039 = vrsqrt.f32 %v555_v40  ;;  %v553_v42 = vmul.f32 %v548_v41, %v1128_v31  ;;  %v552_v43 = vmul.f32 %v546_v29, %v1130_v32 }
 0x645   :  { %v557_v38 = vadd.f32 1e-05, %v553_v42  ;;  %v556_v44 = vadd.f32 1e-05, %v552_v43 }
 0x646   :  { %v550_v47 = vpop.xlane.xlu1 %549 }
 0x647   :  { %1041 = vrsqrt.f32 %v557_v38  ;;  %v554_v48 = vmul.f32 %v550_v47, %v1137_v39 }
 0x648   :  { %1043 = vrsqrt.f32 %v556_v44 }
 0x649   :  { %v558_v49 = vadd.f32 1e-05, %v554_v48 }
 0x64b   :  { %1045 = vrsqrt.f32 %v558_v49 }
 0x64d   :  { %v1040_v46 = vpop.eup %1039 }
 0x64e   :  { %v563_v52 = vmul.f32 %v1040_v46, %v1217_v61 }
 0x650   :  { %v571_v53 = vmul.f32 %v718_v28, %v563_v52 }
 0x651   :  { %v1042_v31 = vpop.eup %1041 }
 0x652   :  { %v1044_v54 = vpop.eup %1043  ;;  %v583_v32 = vadd.f32 %v579_v45, %v571_v53  ;;  %v565_v55 = vmul.f32 %v1042_v31, %v1223_v3 }
 0x653   :  { %v564_v39 = vmul.f32 %v1044_v54, %v1226_v4 }
 0x654   :  { %v587_v58 = vmax.f32 %v583_v32, 0.0  ;;  %v573_v59 = vmul.f32 %v718_v28, %v565_v55 }
 0x655   :  { %v1046_v50 = vpop.eup %1045  ;;  %v572_v60 = vmul.f32 %v718_v28, %v564_v39 }
 0x656   :  { %v566_v61 = vmul.f32 %v1046_v50, %v1233_v9  ;;  %902 = vmatprep.mubr.f32.mxu0 %v587_v58  ;;  %v585_v8 = vadd.f32 %v581_v56, %v573_v59 }
 0x657   :  { %v584_v63 = vadd.f32 %v580_v57, %v572_v60 }
 0x658   :  { %v589_v0 = vmax.f32 %v585_v8, 0.0  ;;  %v574_v1 = vmul.f32 %v718_v28, %v566_v61 }
 0x659   :  { %v588_v2 = vmax.f32 %v584_v63, 0.0 }
 0x65a   :  { %905 = vmatprep.mubr.f32.mxu1 %v589_v0  ;;  %v586_v14 = vadd.f32 %v582_v62, %v574_v1 }
 0x65b   :  { %903 = vmatmul.mubr.f32.vlgmr.msra.gmra.mrb[8].mxu0 %v588_v2 }
 0x65c   :  { %v590_v3 = vmax.f32 %v586_v14, 0.0 }
 0x65e   :  { %906 = vmatmul.mubr.f32.vlgmr.msra.gmra.mrb[4].mxu1 %v590_v3 }
 0x72e   :  { %v904_v4 = vpop.f32.mrb[8].mxu0 }
 0x72f   :  { %v684_v5 = vadd.f32 %v904_v4, %v720_v15  ;;  %v678_v6 = vpop.f32.mrb[9].mxu0 }
 0x730   :  { %v679_v7 = vadd.f32 %v720_v15, %v678_v6 }
 0x731   :  { %698 = vst [vmem:[%s1263_s2 + $0x8] sm:$0xff] %v684_v5  ;;  %v907_v9 = vpop.f32.mrb[4].mxu1 }
 0x732   :  { %697 = vst [vmem:[%s1263_s2] sm:$0xff] %v679_v7  ;;  %v694_v20 = vadd.f32 %v907_v9, %v720_v15  ;;  %v688_v10 = vpop.f32.mrb[5].mxu1 }
 0x733   :  { %v689_v11 = vadd.f32 %v720_v15, %v688_v10 }
 0x734   :  { %700 = vst [vmem:[%s1263_s2 + $0x18] sm:$0xff] %v694_v20 }
 0x735   :  { %699 = vst [vmem:[%s1263_s2 + $0x10] sm:$0xff] %v689_v11 }
 0x736   :  { %705 = vsyncpa [#allocation3], 1 }

</bundles_post_ra>
